<compile_context>
chip_gen: v5e
topology: v5e:2x2
jax: 0.10.0
libtpu: 0.0.40
codegen_flags: <defaults>
</compile_context>

<pallas_src>
import functools

import jax
import jax.numpy as jnp
from jax.experimental import pallas as pl
from jax.experimental.pallas import tpu as pltpu


# ------------------------------ Pallas kernel -------------------------------

def _mask_branch_kernel(x_ref, scale_ref, shift_ref, w_ref, b_ref, o_ref):
    """Two applications of the shared ResidualBlock on a (C, R) lane-dense tile."""
    h = x_ref[...].astype(jnp.float32)      # (C, R)   activations, rows on lanes
    sc = scale_ref[...]                     # (C, 1)   folded BN scale
    sh = shift_ref[...]                     # (C, 1)   folded BN shift
    w = w_ref[...]                          # (C_out, C_in) 1x1-conv weight
    b = b_ref[...]                          # (C, 1)   conv bias
    for _ in range(2):                      # residual_block applied twice (shared params)
        y = h
        for _ in range(3):                  # bn -> relu -> conv1x1, three times (shared)
            h = jnp.maximum(h * sc + sh, 0.0)
            h = jnp.dot(w, h, preferred_element_type=jnp.float32) + b
        h = h + y
    o_ref[...] = h.astype(o_ref.dtype)


def _mask_branch_call(x_rows, scale, shift, w, b):
    C, R = x_rows.shape
    flops = 2 * 6 * C * C * R + 10 * C * R          # 6 matmuls + elementwise
    bytes_accessed = 2 * C * R * 4 + (C * C + 3 * C) * 4
    return pl.pallas_call(
        _mask_branch_kernel,
        out_shape=jax.ShapeDtypeStruct((C, R), x_rows.dtype),
        grid=(1,),
        in_specs=[
            pl.BlockSpec((C, R), lambda i: (0, 0)),
            pl.BlockSpec((C, 1), lambda i: (0, 0)),
            pl.BlockSpec((C, 1), lambda i: (0, 0)),
            pl.BlockSpec((C, C), lambda i: (0, 0)),
            pl.BlockSpec((C, 1), lambda i: (0, 0)),
        ],
        out_specs=pl.BlockSpec((C, R), lambda i: (0, 0)),
        compiler_params=pltpu.CompilerParams(
            dimension_semantics=("arbitrary",)),
        cost_estimate=pl.CostEstimate(
            flops=flops, transcendentals=0, bytes_accessed=bytes_accessed),
    )(x_rows, scale, shift, w, b)


# ------------------------------- JAX wrapper --------------------------------

def _maxpool_3x3_s2_p1(x_nchw):
    # PyTorch MaxPool2d(kernel_size=3, stride=2, padding=1) semantics (pad = -inf)
    return jax.lax.reduce_window(
        x_nchw, -jnp.inf, jax.lax.max,
        window_dimensions=(1, 1, 3, 3),
        window_strides=(1, 1, 2, 2),
        padding=((0, 0), (0, 0), (1, 1), (1, 1)))


def mask_branch19_forward(x_nchw, params):
    n, c, _, _ = x_nchw.shape

    pooled = _maxpool_3x3_s2_p1(x_nchw)                    # (N, C, H', W')
    hp, wp = pooled.shape[2], pooled.shape[3]

    # Lane-dense layout: channels on sublanes, all (n, h, w) positions on lanes.
    rows = pooled.transpose(1, 0, 2, 3).reshape(c, n * hp * wp)   # (C, R)
    r = rows.shape[1]
    r_pad = ((r + 127) // 128) * 128                       # pad lanes to multiple of 128
    rows = jnp.pad(rows, ((0, 0), (0, r_pad - r)))

    out_rows = _mask_branch_call(rows, params['scale'], params['shift'],
                                 params['w'], params['b'])

    out = out_rows[:, :r].reshape(c, n, hp, wp).transpose(1, 0, 2, 3)
    return out


# ------------------------------- parameters ---------------------------------

def make_params(key, channels, bn_eps=1e-5):
    """Deterministic synthetic params for the shared (BatchNorm2d, Conv2d 1x1) pair."""
    k = jax.random.split(key, 6)
    gamma = 1.0 + 0.1 * jax.random.normal(k[0], (channels,), jnp.float32)
    beta = 0.1 * jax.random.normal(k[1], (channels,), jnp.float32)
    mean = 0.1 * jax.random.normal(k[2], (channels,), jnp.float32)
    var = 1.0 + 0.5 * jax.random.uniform(k[3], (channels,), jnp.float32)
    w = jax.random.normal(k[4], (channels, channels), jnp.float32) / jnp.sqrt(channels)
    b = 0.1 * jax.random.normal(k[5], (channels,), jnp.float32)

    scale = gamma / jnp.sqrt(var + bn_eps)                 # folded eval-mode BN
    shift = beta - mean * scale
    return dict(
        scale=scale.reshape(channels, 1),
        shift=shift.reshape(channels, 1),
        w=w,                                               # (C_out, C_in): out = w @ x
        b=b.reshape(channels, 1),
    )


# --------------------------- pure-JAX reference ------------------------------

def _reference_forward(x_nchw, params):
    pooled = _maxpool_3x3_s2_p1(x_nchw)
    sc = params['scale'].reshape(1, -1, 1, 1)
    sh = params['shift'].reshape(1, -1, 1, 1)
    w = params['w']
    b = params['b'].reshape(1, -1, 1, 1)
    h = pooled
    for _ in range(2):
        y = h
        for _ in range(3):
            h = jnp.maximum(h * sc + sh, 0.0)
            h = jnp.einsum('oi,nihw->nohw', w, h) + b
        h = h + y
    return h


# ----------------------------------- main ------------------------------------

if __name__ == "__main__":
    key = jax.random.PRNGKey(0)
    pkey, xkey = jax.random.split(key)

    CHANNELS = 8
    BATCH = 2
    # 19x19 input (the branch's nominal resolution); maxpool(3,2,1) -> 10x10.
    x = jax.random.normal(xkey, (BATCH, CHANNELS, 19, 19), jnp.float32)

    params = make_params(pkey, CHANNELS)

    fwd = jax.jit(functools.partial(mask_branch19_forward, params=params))
    out = fwd(x)
    jax.block_until_ready(out)

    assert out.shape == (BATCH, CHANNELS, 10, 10), out.shape
    assert bool(jnp.all(jnp.isfinite(out)))

    ref = _reference_forward(x, params)
    max_err = float(jnp.max(jnp.abs(out - ref)))
    assert max_err < 1e-3, f"mismatch vs reference: {max_err}"

    print("KERNEL_OK")
</pallas_src>

<mosaic_0001>
module attributes {stable_mosaic.version = 11 : i64} {
  func.func @_mask_branch_kernel(%arg0: i32, %arg1: memref<8x256xf32, #tpu.memory_space<vmem>>, %arg2: memref<8x1xf32, #tpu.memory_space<vmem>>, %arg3: memref<8x1xf32, #tpu.memory_space<vmem>>, %arg4: memref<8x8xf32, #tpu.memory_space<vmem>>, %arg5: memref<8x1xf32, #tpu.memory_space<vmem>>, %arg6: memref<8x256xf32, #tpu.memory_space<vmem>>) attributes {dimension_semantics = [#tpu.dimension_semantics<arbitrary>], iteration_bounds = array<i64: 1>, scalar_prefetch = 0 : i64, scratch_operands = 0 : i64, tpu.core_type = #tpu.core_type<tc>, window_params = [{pipeline_mode = #tpu.pipeline_mode<synchronous>, transform_indices = @transform_0, window_bounds = array<i64: 8, 256>}, {pipeline_mode = #tpu.pipeline_mode<synchronous>, transform_indices = @transform_1, window_bounds = array<i64: 8, 1>}, {pipeline_mode = #tpu.pipeline_mode<synchronous>, transform_indices = @transform_2, window_bounds = array<i64: 8, 1>}, {pipeline_mode = #tpu.pipeline_mode<synchronous>, transform_indices = @transform_3, window_bounds = array<i64: 8, 8>}, {pipeline_mode = #tpu.pipeline_mode<synchronous>, transform_indices = @transform_4, window_bounds = array<i64: 8, 1>}, {pipeline_mode = #tpu.pipeline_mode<synchronous>, transform_indices = @transform_5, window_bounds = array<i64: 8, 256>}]} {
    %c0 = arith.constant 0 : index
    %c0_0 = arith.constant 0 : index
    %0 = vector.load %arg1[%c0, %c0_0] : memref<8x256xf32, #tpu.memory_space<vmem>>, vector<8x256xf32>
    %c0_1 = arith.constant 0 : index
    %c0_2 = arith.constant 0 : index
    %1 = vector.load %arg2[%c0_1, %c0_2] : memref<8x1xf32, #tpu.memory_space<vmem>>, vector<8x1xf32>
    %c0_3 = arith.constant 0 : index
    %c0_4 = arith.constant 0 : index
    %2 = vector.load %arg3[%c0_3, %c0_4] : memref<8x1xf32, #tpu.memory_space<vmem>>, vector<8x1xf32>
    %c0_5 = arith.constant 0 : index
    %c0_6 = arith.constant 0 : index
    %3 = vector.load %arg4[%c0_5, %c0_6] : memref<8x8xf32, #tpu.memory_space<vmem>>, vector<8x8xf32>
    %c0_7 = arith.constant 0 : index
    %c0_8 = arith.constant 0 : index
    %4 = vector.load %arg5[%c0_7, %c0_8] : memref<8x1xf32, #tpu.memory_space<vmem>>, vector<8x1xf32>
    %5 = vector.broadcast %1 : vector<8x1xf32> to vector<8x256xf32>
    %6 = arith.mulf %0, %5 : vector<8x256xf32>
    %7 = vector.broadcast %2 : vector<8x1xf32> to vector<8x256xf32>
    %8 = arith.addf %6, %7 : vector<8x256xf32>
    %cst = arith.constant 0.000000e+00 : f32
    %9 = vector.broadcast %cst : f32 to vector<8x256xf32>
    %10 = arith.maximumf %8, %9 : vector<8x256xf32>
    %cst_9 = arith.constant dense<0.000000e+00> : vector<8x256xf32>
    %11 = tpu.matmul %3, %10, %cst_9 {dimension_numbers = #tpu.dot_dimension_numbers<[1], [0], [0], [1], [0, 0, 1, 1], [], []>} : vector<8x8xf32>, vector<8x256xf32>, vector<8x256xf32> -> vector<8x256xf32>
    %12 = vector.broadcast %4 : vector<8x1xf32> to vector<8x256xf32>
    %13 = arith.addf %11, %12 : vector<8x256xf32>
    %14 = vector.broadcast %1 : vector<8x1xf32> to vector<8x256xf32>
    %15 = arith.mulf %13, %14 : vector<8x256xf32>
    %16 = vector.broadcast %2 : vector<8x1xf32> to vector<8x256xf32>
    %17 = arith.addf %15, %16 : vector<8x256xf32>
    %cst_10 = arith.constant 0.000000e+00 : f32
    %18 = vector.broadcast %cst_10 : f32 to vector<8x256xf32>
    %19 = arith.maximumf %17, %18 : vector<8x256xf32>
    %cst_11 = arith.constant dense<0.000000e+00> : vector<8x256xf32>
    %20 = tpu.matmul %3, %19, %cst_11 {dimension_numbers = #tpu.dot_dimension_numbers<[1], [0], [0], [1], [0, 0, 1, 1], [], []>} : vector<8x8xf32>, vector<8x256xf32>, vector<8x256xf32> -> vector<8x256xf32>
    %21 = vector.broadcast %4 : vector<8x1xf32> to vector<8x256xf32>
    %22 = arith.addf %20, %21 : vector<8x256xf32>
    %23 = vector.broadcast %1 : vector<8x1xf32> to vector<8x256xf32>
    %24 = arith.mulf %22, %23 : vector<8x256xf32>
    %25 = vector.broadcast %2 : vector<8x1xf32> to vector<8x256xf32>
    %26 = arith.addf %24, %25 : vector<8x256xf32>
    %cst_12 = arith.constant 0.000000e+00 : f32
    %27 = vector.broadcast %cst_12 : f32 to vector<8x256xf32>
    %28 = arith.maximumf %26, %27 : vector<8x256xf32>
    %cst_13 = arith.constant dense<0.000000e+00> : vector<8x256xf32>
    %29 = tpu.matmul %3, %28, %cst_13 {dimension_numbers = #tpu.dot_dimension_numbers<[1], [0], [0], [1], [0, 0, 1, 1], [], []>} : vector<8x8xf32>, vector<8x256xf32>, vector<8x256xf32> -> vector<8x256xf32>
    %30 = vector.broadcast %4 : vector<8x1xf32> to vector<8x256xf32>
    %31 = arith.addf %29, %30 : vector<8x256xf32>
    %32 = arith.addf %31, %0 : vector<8x256xf32>
    %33 = vector.broadcast %1 : vector<8x1xf32> to vector<8x256xf32>
    %34 = arith.mulf %32, %33 : vector<8x256xf32>
    %35 = vector.broadcast %2 : vector<8x1xf32> to vector<8x256xf32>
    %36 = arith.addf %34, %35 : vector<8x256xf32>
    %cst_14 = arith.constant 0.000000e+00 : f32
    %37 = vector.broadcast %cst_14 : f32 to vector<8x256xf32>
    %38 = arith.maximumf %36, %37 : vector<8x256xf32>
    %cst_15 = arith.constant dense<0.000000e+00> : vector<8x256xf32>
    %39 = tpu.matmul %3, %38, %cst_15 {dimension_numbers = #tpu.dot_dimension_numbers<[1], [0], [0], [1], [0, 0, 1, 1], [], []>} : vector<8x8xf32>, vector<8x256xf32>, vector<8x256xf32> -> vector<8x256xf32>
    %40 = vector.broadcast %4 : vector<8x1xf32> to vector<8x256xf32>
    %41 = arith.addf %39, %40 : vector<8x256xf32>
    %42 = vector.broadcast %1 : vector<8x1xf32> to vector<8x256xf32>
    %43 = arith.mulf %41, %42 : vector<8x256xf32>
    %44 = vector.broadcast %2 : vector<8x1xf32> to vector<8x256xf32>
    %45 = arith.addf %43, %44 : vector<8x256xf32>
    %cst_16 = arith.constant 0.000000e+00 : f32
    %46 = vector.broadcast %cst_16 : f32 to vector<8x256xf32>
    %47 = arith.maximumf %45, %46 : vector<8x256xf32>
    %cst_17 = arith.constant dense<0.000000e+00> : vector<8x256xf32>
    %48 = tpu.matmul %3, %47, %cst_17 {dimension_numbers = #tpu.dot_dimension_numbers<[1], [0], [0], [1], [0, 0, 1, 1], [], []>} : vector<8x8xf32>, vector<8x256xf32>, vector<8x256xf32> -> vector<8x256xf32>
    %49 = vector.broadcast %4 : vector<8x1xf32> to vector<8x256xf32>
    %50 = arith.addf %48, %49 : vector<8x256xf32>
    %51 = vector.broadcast %1 : vector<8x1xf32> to vector<8x256xf32>
    %52 = arith.mulf %50, %51 : vector<8x256xf32>
    %53 = vector.broadcast %2 : vector<8x1xf32> to vector<8x256xf32>
    %54 = arith.addf %52, %53 : vector<8x256xf32>
    %cst_18 = arith.constant 0.000000e+00 : f32
    %55 = vector.broadcast %cst_18 : f32 to vector<8x256xf32>
    %56 = arith.maximumf %54, %55 : vector<8x256xf32>
    %cst_19 = arith.constant dense<0.000000e+00> : vector<8x256xf32>
    %57 = tpu.matmul %3, %56, %cst_19 {dimension_numbers = #tpu.dot_dimension_numbers<[1], [0], [0], [1], [0, 0, 1, 1], [], []>} : vector<8x8xf32>, vector<8x256xf32>, vector<8x256xf32> -> vector<8x256xf32>
    %58 = vector.broadcast %4 : vector<8x1xf32> to vector<8x256xf32>
    %59 = arith.addf %57, %58 : vector<8x256xf32>
    %60 = arith.addf %59, %32 : vector<8x256xf32>
    %c0_20 = arith.constant 0 : index
    %c0_21 = arith.constant 0 : index
    %61 = vector.load %arg6[%c0_20, %c0_21] : memref<8x256xf32, #tpu.memory_space<vmem>>, vector<8x256xf32>
    tpu.vector_store %arg6[%c0_20, %c0_21], %60 {strides = array<i32>} : memref<8x256xf32, #tpu.memory_space<vmem>>, vector<8x256xf32>,
    return
  }
  func.func @transform_0(%arg0: i32) -> (i32, i32) {
    %c0_i32 = arith.constant 0 : i32
    %c0_i32_0 = arith.constant 0 : i32
    %c0_i32_1 = arith.constant 0 : i32
    return %c0_i32, %c0_i32_0 : i32, i32
  }
  func.func @transform_1(%arg0: i32) -> (i32, i32) {
    %c0_i32 = arith.constant 0 : i32
    %c0_i32_0 = arith.constant 0 : i32
    %c0_i32_1 = arith.constant 0 : i32
    return %c0_i32, %c0_i32_0 : i32, i32
  }
  func.func @transform_2(%arg0: i32) -> (i32, i32) {
    %c0_i32 = arith.constant 0 : i32
    %c0_i32_0 = arith.constant 0 : i32
    %c0_i32_1 = arith.constant 0 : i32
    return %c0_i32, %c0_i32_0 : i32, i32
  }
  func.func @transform_3(%arg0: i32) -> (i32, i32) {
    %c0_i32 = arith.constant 0 : i32
    %c0_i32_0 = arith.constant 0 : i32
    %c0_i32_1 = arith.constant 0 : i32
    return %c0_i32, %c0_i32_0 : i32, i32
  }
  func.func @transform_4(%arg0: i32) -> (i32, i32) {
    %c0_i32 = arith.constant 0 : i32
    %c0_i32_0 = arith.constant 0 : i32
    %c0_i32_1 = arith.constant 0 : i32
    return %c0_i32, %c0_i32_0 : i32, i32
  }
  func.func @transform_5(%arg0: i32) -> (i32, i32) {
    %c0_i32 = arith.constant 0 : i32
    %c0_i32_0 = arith.constant 0 : i32
    %c0_i32_1 = arith.constant 0 : i32
    return %c0_i32, %c0_i32_0 : i32, i32
  }
}

</mosaic_0001>

<bundles_post_ra>
// kernel: mask_branch19_forward.1
= control target key start
LH: loop header
LB: loop body
LE: loop exit
PB: predicated region body
PF: predicated region fallthrough
CT: control target
= control target key end

     0   :  { %v346_v0 = vmov 0   ;;  %vm47_vm0 = vcmask 64512   ;;  %s469_s1 = inlined_call_operand.vmem [shape: f32[8,1], index: 1, kind: input, shape index: {}]   ;;  %s470_s2 = inlined_call_operand.vmem [shape: f32[8,1], index: 2, kind: input, shape index: {}]   ;;  %s471_s4 = inlined_call_operand.vmem [shape: f32[8,1], index: 4, kind: input, shape index: {}]   ;;  %s472_s0 = inlined_call_operand.vmem [shape: f32[8,256], index: 0, kind: input, shape index: {}]   ;;  %s473_s3 = inlined_call_operand.vmem [shape: f32[8,8], index: 3, kind: input, shape index: {}]   ;;  %s474_s5 = inlined_call_operand.vmem [shape: f32[8,256], index: 5, kind: output, shape index: {}]  }
   0x1   :  { %344 = vset.pattern.permute.xlu0 %v346_v0  ;;  %v22_v1 = vld [vmem:[%s469_s1] sm:$0xff]  ;;  %345 = vset.pattern.permute.xlu1 %v346_v0  ;;  %v21_v6 = vld [vmem:[%s472_s0 + $0x8] sm:$0xff] }
   0x2   :  { %28 = vperm.xlu0 %344, %v22_v1   ;;  %v23_v2 = vld [vmem:[%s470_s2] sm:$0xff] }
   0x3   :  { %v25_v3 = vld [vmem:[%s471_s4] sm:$0xff] }
   0x4   :  { %44 = vperm.xlu1 %345, %v25_v3   ;;  %v20_v5 = vld [vmem:[%s472_s0] sm:$0xff] }
   0x5   :  { %v403_v14 = vld [vmem:[%s473_s3] sm:$0xff] }
   0xa   :  { %35 = vperm.xlu0 %344, %v23_v2  }
  0x74   :  { %v386_v4 = vpop.permute.xlu0 %28 }
  0x75   :  { %v31_v7 = vmul.f32 %v386_v4, %v20_v5  ;;  %v32_v8 = vmul.f32 %v386_v4, %v21_v6 }
  0x76   :  { %v409_v15 = vpop.permute.xlu1 %44 }
  0x7c   :  { %v396_v9 = vpop.permute.xlu0 %35 }
  0x7d   :  { %v38_v10 = vadd.f32 %v396_v9, %v31_v7  ;;  %v39_v11 = vadd.f32 %v396_v9, %v32_v8 }
  0x7f   :  { %v40_v12 = vmax.f32 %v38_v10, 0.0  ;;  %v41_v13 = vmax.f32 %v39_v11, 0.0 }
  0x81   :  { %66 = vmatpush.msra.mxu0 %v40_v12  ;;  %86 = vmatpush.msra.mxu1 %v41_v13 }
  0x82   :  { %331 = vmatmul.msk.f32.vlgmr.msra.gmra.mxu0 %vm47_vm0, %v403_v14  ;;  %332 = vmatmul.msk.f32.vlgmr.msra.gmra.mxu1 %vm47_vm0, %v403_v14 }
  0xff   :  { %v68_v16 = vpop.f32.mrf.mxu0  ;;  %v88_v17 = vpop.f32.mrf.mxu1 }
 0x100   :  { %v69_v18 = vadd.f32 %v68_v16, %v409_v15  ;;  %v89_v19 = vadd.f32 %v88_v17, %v409_v15 }
 0x102   :  { %v91_v20 = vmul.f32 %v69_v18, %v386_v4  ;;  %v92_v21 = vmul.f32 %v89_v19, %v386_v4 }
 0x104   :  { %v93_v22 = vadd.f32 %v91_v20, %v396_v9  ;;  %v94_v23 = vadd.f32 %v92_v21, %v396_v9 }
 0x106   :  { %v95_v24 = vmax.f32 %v93_v22, 0.0  ;;  %v96_v25 = vmax.f32 %v94_v23, 0.0 }
 0x108   :  { %112 = vmatpush.msra.mxu2 %v95_v24  ;;  %132 = vmatpush.msra.mxu3 %v96_v25 }
 0x109   :  { %333 = vmatmul.msk.f32.vlgmr.msra.gmra.mxu2 %vm47_vm0, %v403_v14  ;;  %334 = vmatmul.msk.f32.vlgmr.msra.gmra.mxu3 %vm47_vm0, %v403_v14 }
 0x18c   :  { %v114_v26 = vpop.f32.mrf.mxu2  ;;  %v134_v27 = vpop.f32.mrf.mxu3 }
 0x18d   :  { %v115_v28 = vadd.f32 %v114_v26, %v409_v15  ;;  %v135_v29 = vadd.f32 %v134_v27, %v409_v15 }
 0x18f   :  { %v137_v30 = vmul.f32 %v115_v28, %v386_v4  ;;  %v138_v31 = vmul.f32 %v135_v29, %v386_v4 }
 0x191   :  { %v139_v32 = vadd.f32 %v137_v30, %v396_v9  ;;  %v140_v33 = vadd.f32 %v138_v31, %v396_v9 }
 0x193   :  { %v141_v34 = vmax.f32 %v139_v32, 0.0  ;;  %v142_v35 = vmax.f32 %v140_v33, 0.0 }
 0x195   :  { %158 = vmatpush.msrb.mxu0 %v141_v34  ;;  %178 = vmatpush.msrb.mxu1 %v142_v35 }
 0x196   :  { %335 = vmatmul.msk.f32.vlgmr.msrb.gmra.mxu0 %vm47_vm0, %v403_v14  ;;  %336 = vmatmul.msk.f32.vlgmr.msrb.gmra.mxu1 %vm47_vm0, %v403_v14 }
 0x213   :  { %v160_v36 = vpop.f32.mrf.mxu0  ;;  %v180_v37 = vpop.f32.mrf.mxu1 }
 0x214   :  { %v161_v38 = vadd.f32 %v160_v36, %v409_v15  ;;  %v181_v39 = vadd.f32 %v180_v37, %v409_v15 }
 0x216   :  { %v183_v40 = vadd.f32 %v161_v38, %v20_v5  ;;  %v184_v41 = vadd.f32 %v181_v39, %v21_v6 }
 0x218   :  { %v185_v42 = vmul.f32 %v183_v40, %v386_v4  ;;  %v186_v43 = vmul.f32 %v184_v41, %v386_v4 }
 0x21a   :  { %v187_v44 = vadd.f32 %v185_v42, %v396_v9  ;;  %v188_v45 = vadd.f32 %v186_v43, %v396_v9 }
 0x21c   :  { %v189_v46 = vmax.f32 %v187_v44, 0.0  ;;  %v190_v47 = vmax.f32 %v188_v45, 0.0 }
 0x21e   :  { %206 = vmatpush.msrb.mxu2 %v189_v46  ;;  %226 = vmatpush.msrb.mxu3 %v190_v47 }
 0x21f   :  { %337 = vmatmul.msk.f32.vlgmr.msrb.gmra.mxu2 %vm47_vm0, %v403_v14  ;;  %338 = vmatmul.msk.f32.vlgmr.msrb.gmra.mxu3 %vm47_vm0, %v403_v14 }
 0x2a2   :  { %v208_v48 = vpop.f32.mrf.mxu2  ;;  %v228_v49 = vpop.f32.mrf.mxu3 }
 0x2a3   :  { %v209_v50 = vadd.f32 %v208_v48, %v409_v15  ;;  %v229_v51 = vadd.f32 %v228_v49, %v409_v15 }
 0x2a5   :  { %v231_v52 = vmul.f32 %v209_v50, %v386_v4  ;;  %v232_v53 = vmul.f32 %v229_v51, %v386_v4 }
 0x2a7   :  { %v233_v54 = vadd.f32 %v231_v52, %v396_v9  ;;  %v234_v55 = vadd.f32 %v232_v53, %v396_v9 }
 0x2a9   :  { %v235_v56 = vmax.f32 %v233_v54, 0.0  ;;  %v236_v57 = vmax.f32 %v234_v55, 0.0 }
 0x2ab   :  { %252 = vmatpush.msra.mxu0 %v235_v56  ;;  %272 = vmatpush.msra.mxu1 %v236_v57 }
 0x2ac   :  { %339 = vmatmul.msk.f32.vlgmr.msra.gmra.mxu0 %vm47_vm0, %v403_v14  ;;  %340 = vmatmul.msk.f32.vlgmr.msra.gmra.mxu1 %vm47_vm0, %v403_v14 }
 0x329   :  { %v254_v58 = vpop.f32.mrf.mxu0  ;;  %v274_v59 = vpop.f32.mrf.mxu1 }
 0x32a   :  { %v255_v60 = vadd.f32 %v254_v58, %v409_v15  ;;  %v275_v61 = vadd.f32 %v274_v59, %v409_v15 }
 0x32c   :  { %v277_v62 = vmul.f32 %v255_v60, %v386_v4  ;;  %v278_v63 = vmul.f32 %v275_v61, %v386_v4 }
 0x32e   :  { %v279_v0 = vadd.f32 %v277_v62, %v396_v9  ;;  %v280_v1 = vadd.f32 %v278_v63, %v396_v9 }
 0x330   :  { %v281_v2 = vmax.f32 %v279_v0, 0.0  ;;  %v282_v3 = vmax.f32 %v280_v1, 0.0 }
 0x332   :  { %298 = vmatpush.msra.mxu2 %v281_v2  ;;  %318 = vmatpush.msra.mxu3 %v282_v3 }
 0x333   :  { %341 = vmatmul.msk.f32.vlgmr.msra.gmra.mxu2 %vm47_vm0, %v403_v14  ;;  %342 = vmatmul.msk.f32.vlgmr.msra.gmra.mxu3 %vm47_vm0, %v403_v14 }
 0x3b6   :  { %v300_v5 = vpop.f32.mrf.mxu2  ;;  %v320_v6 = vpop.f32.mrf.mxu3 }
 0x3b7   :  { %v301_v7 = vadd.f32 %v300_v5, %v409_v15  ;;  %v321_v4 = vadd.f32 %v320_v6, %v409_v15 }
 0x3b9   :  { %v323_v8 = vadd.f32 %v301_v7, %v183_v40  ;;  %v324_v10 = vadd.f32 %v321_v4, %v184_v41 }
 0x3bb   :  { %325 = vst [vmem:[%s474_s5] sm:$0xff] %v323_v8 }
 0x3bc   :  { %326 = vst [vmem:[%s474_s5 + $0x8] sm:$0xff] %v324_v10 }

</bundles_post_ra>
